<compile_context>
chip_gen: v7x
topology: tpu7x:2x2x1
jax: 0.10.0
libtpu: 0.0.40
codegen_flags: <defaults>
</compile_context>

<pallas_src>
import functools
import math

import jax
import jax.numpy as jnp
from jax import lax
from jax.experimental import pallas as pl
from jax.experimental.pallas import tpu as pltpu


# ---------------------------------------------------------------------------
# Kernel
# ---------------------------------------------------------------------------
def noisy_linear_kernel(x_ref, wmu_ref, wsig_ref, ein_ref, eout_ref,
                        bmu_ref, bsig_ref, o_ref, accm_ref, accs_ref,
                        *, mxu_dtype):
    k = pl.program_id(1)

    @pl.when(k == 0)
    def _():
        accm_ref[...] = jnp.zeros_like(accm_ref)
        accs_ref[...] = jnp.zeros_like(accs_ref)

    x = x_ref[...]                                  # (B, TK)
    xe = x * ein_ref[...]                           # factorized noise scale (f32 VPU)

    wmu = wmu_ref[...]                              # (TN, TK) native dtype (bf16/f32)
    wsig = wsig_ref[...]
    if wmu.dtype != mxu_dtype:
        wmu = wmu.astype(mxu_dtype)
        wsig = wsig.astype(mxu_dtype)
    x = x.astype(mxu_dtype)
    xe = xe.astype(mxu_dtype)

    # 'NT' matmuls: contract the In axis of both operands (no w.T relayout).
    nt = (((1,), (1,)), ((), ()))
    accm_ref[...] += lax.dot_general(x, wmu, dimension_numbers=nt,
                                     preferred_element_type=jnp.float32)
    accs_ref[...] += lax.dot_general(xe, wsig, dimension_numbers=nt,
                                     preferred_element_type=jnp.float32)

    @pl.when(k == pl.num_programs(1) - 1)
    def _():
        eo = eout_ref[...]                          # (1, TN); also bias_epsilon
        bias = bmu_ref[...] + bsig_ref[...] * eo
        y = accm_ref[...] + eo * accs_ref[...] + bias
        o_ref[...] = y.astype(o_ref.dtype)


# ---------------------------------------------------------------------------
# Wrapper helpers
# ---------------------------------------------------------------------------
def _round_up(x, m):
    return ((x + m - 1) // m) * m


def _choose_tile_and_pad(dim, max_tile):
    """Return (tile, padded_dim): tile is a multiple of 128 dividing padded_dim."""
    dim_p = _round_up(dim, 128)
    lim = min(dim_p, max_tile)
    best, t = 128, 128
    while t <= lim:
        if dim_p % t == 0:
            best = t
        t += 128
    # Guard the "128 * prime" cliff: accept a little extra padding instead of
    # many tiny grid steps.
    if dim_p >= 4 * best and best < min(512, max_tile):
        best = min(512, max_tile)
        dim_p = _round_up(dim_p, best)
    return best, dim_p


def _generation_defaults(w_itemsize):
    """Per-generation tile ceilings and scoped-VMEM budget."""
    try:
        vmem_cap = pltpu.get_tpu_info().vmem_capacity_bytes
    except Exception:
        vmem_cap = 64 * 1024 * 1024        # conservative fallback (v7x per-TC)
    if vmem_cap >= 96 * 1024 * 1024:       # v5e / v6e: 128 MiB physical VMEM
        return 1024, 2048, 96 * 1024 * 1024
    # v7x: 64 MiB per TensorCore — re-derive tiles for the smaller budget.
    if w_itemsize <= 2:                    # bf16 weight streams fit v6e-style tiles
        return 1024, 2048, 48 * 1024 * 1024
    return 512, 2048, 48 * 1024 * 1024


def _pad2(a, shape, dtype):
    """Pad-or-passthrough: no HBM copy when already the right shape/dtype."""
    if a.shape == tuple(shape) and a.dtype == jnp.dtype(dtype):
        return a
    return jnp.zeros(shape, dtype).at[:a.shape[0], :a.shape[1]].set(a.astype(dtype))


# ---------------------------------------------------------------------------
# Wrapper
# ---------------------------------------------------------------------------
def noisy_linear(x, weight_mu, weight_sigma, eps_in, eps_out,
                 bias_mu, bias_sigma, *, mxu_dtype=None,
                 tn_max=None, tk_max=None, weight_buffers=None):
    """NoisyLinear forward.

    x:               (B, In)
    weight_mu/sigma: (Out, In)   — streamed in their native dtype (bf16 halves bytes)
    eps_in:          (In,)       factorized noise (W_eps = outer(eps_out, eps_in))
    eps_out:         (Out,)      (also bias_epsilon)
    bias_mu/sigma:   (Out,)
    mxu_dtype:       None → use the weight dtype as MXU operand dtype.
    weight_buffers:  optional pipeline depth for the two weight streams.
    """
    B, In = x.shape
    Out, In2 = weight_mu.shape
    assert In == In2

    f32 = jnp.float32
    w_dtype = weight_mu.dtype
    w_itemsize = jnp.dtype(w_dtype).itemsize
    mxu = jnp.dtype(mxu_dtype) if mxu_dtype is not None else jnp.dtype(w_dtype)

    gen_tn, gen_tk, vmem_limit = _generation_defaults(w_itemsize)
    tn_max = gen_tn if tn_max is None else max(128, (tn_max // 128) * 128)
    tk_max = gen_tk if tk_max is None else max(128, (tk_max // 128) * 128)

    B_p = _round_up(max(B, 8), 8)                  # sublane-friendly batch
    TN, Out_p = _choose_tile_and_pad(Out, tn_max)  # lane-dense output stores
    TK, In_p = _choose_tile_and_pad(In, tk_max)

    # v7x megacore: make sure the "parallel" Out axis has >=2 tiles when possible.
    if Out_p // TN < 2 and Out_p >= 256:
        best, t = 128, 128
        while t <= Out_p // 2:
            if Out_p % t == 0:
                best = t
            t += 128
        TN = best

    # x / eps / bias padding is cheap (tiny arrays); weight padding is skipped
    # whenever Out and In are already 128-aligned (no full-array HBM copy).
    xp = _pad2(x, (B_p, In_p), x.dtype)
    wmu = _pad2(weight_mu, (Out_p, In_p), w_dtype)
    wsig = _pad2(weight_sigma, (Out_p, In_p), w_dtype)
    ein = jnp.zeros((1, In_p), f32).at[0, :In].set(eps_in.astype(f32))
    eout = jnp.zeros((1, Out_p), f32).at[0, :Out].set(eps_out.astype(f32))
    bmu = jnp.zeros((1, Out_p), f32).at[0, :Out].set(bias_mu.astype(f32))
    bsig = jnp.zeros((1, Out_p), f32).at[0, :Out].set(bias_sigma.astype(f32))

    grid = (Out_p // TN, In_p // TK)               # (Out tiles, K tiles) — K last
    kernel = functools.partial(noisy_linear_kernel, mxu_dtype=mxu)

    w_spec_kwargs = {}
    if weight_buffers is not None:
        w_spec_kwargs["pipeline_mode"] = pl.Buffered(weight_buffers)

    out_p = pl.pallas_call(
        kernel,
        out_shape=jax.ShapeDtypeStruct((B_p, Out_p), x.dtype),
        grid_spec=pltpu.PrefetchScalarGridSpec(
            num_scalar_prefetch=0,
            grid=grid,
            in_specs=[
                pl.BlockSpec((B_p, TK), lambda j, k: (0, k)),              # x
                pl.BlockSpec((TN, TK), lambda j, k: (j, k), **w_spec_kwargs),  # W_mu
                pl.BlockSpec((TN, TK), lambda j, k: (j, k), **w_spec_kwargs),  # W_sigma
                pl.BlockSpec((1, TK), lambda j, k: (0, k)),                # eps_in
                pl.BlockSpec((1, TN), lambda j, k: (0, j)),                # eps_out
                pl.BlockSpec((1, TN), lambda j, k: (0, j)),                # bias_mu
                pl.BlockSpec((1, TN), lambda j, k: (0, j)),                # bias_sigma
            ],
            out_specs=pl.BlockSpec((B_p, TN), lambda j, k: (0, j)),
            scratch_shapes=[pltpu.VMEM((B_p, TN), jnp.float32),            # mu acc
                            pltpu.VMEM((B_p, TN), jnp.float32)],           # sigma acc
        ),
        compiler_params=pltpu.CompilerParams(
            # Out-tile axis parallel (v7x: 2 TCs), K reduction axis arbitrary.
            dimension_semantics=("parallel", "arbitrary"),
            vmem_limit_bytes=vmem_limit,
        ),
    )(xp, wmu, wsig, ein, eout, bmu, bsig)

    return out_p[:B, :Out]


# ---------------------------------------------------------------------------
# Parameter / noise init (mirrors reset_parameters / reset_noise)
# ---------------------------------------------------------------------------
def scale_noise(key, size):
    """Factorized gaussian noise: sign(x) * sqrt(|x|)."""
    x = jax.random.normal(key, (size,), dtype=jnp.float32)
    return jnp.sign(x) * jnp.sqrt(jnp.abs(x))


def init_noisy_linear_params(key, in_features, out_features, std_init=0.5):
    k_wmu, k_bmu, k_ein, k_eout = jax.random.split(key, 4)
    mu_range = 1.0 / math.sqrt(in_features)

    weight_mu = jax.random.uniform(
        k_wmu, (out_features, in_features), jnp.float32,
        minval=-mu_range, maxval=mu_range)
    weight_sigma = jnp.full((out_features, in_features),
                            std_init / math.sqrt(in_features), jnp.float32)
    bias_mu = jax.random.uniform(
        k_bmu, (out_features,), jnp.float32, minval=-mu_range, maxval=mu_range)
    bias_sigma = jnp.full((out_features,),
                          std_init / math.sqrt(out_features), jnp.float32)

    eps_in = scale_noise(k_ein, in_features)      # (In,)
    eps_out = scale_noise(k_eout, out_features)   # (Out,)  == bias_epsilon
    return weight_mu, weight_sigma, eps_in, eps_out, bias_mu, bias_sigma


def _reference(x, wmu, wsig, ein, eout, bmu, bsig):
    w = wmu + wsig * jnp.outer(eout, ein)
    b = bmu + bsig * eout
    return jnp.dot(x, w.T, precision=lax.Precision.HIGHEST) + b


if __name__ == "__main__":
    key = jax.random.PRNGKey(0)
    k_p1, k_x1, k_p2, k_x2 = jax.random.split(key, 4)

    # --- Test 1: tiny module-like shapes (In=32, Out=16, B=2), f32 weights ---
    in_f, out_f, batch = 32, 16, 2
    wmu1, wsig1, ein1, eout1, bmu1, bsig1 = init_noisy_linear_params(k_p1, in_f, out_f)
    x1 = jax.random.normal(k_x1, (batch, in_f), dtype=jnp.float32)
    ref1 = _reference(x1, wmu1, wsig1, ein1, eout1, bmu1, bsig1)

    out1 = jax.block_until_ready(
        noisy_linear(x1, wmu1, wsig1, ein1, eout1, bmu1, bsig1))
    assert out1.shape == (batch, out_f)
    assert jnp.allclose(out1, ref1, atol=1e-5, rtol=1e-5)

    # --- Test 2: same shapes, bf16 weight streaming (half HBM weight bytes) ---
    out1_bf16 = jax.block_until_ready(
        noisy_linear(x1, wmu1.astype(jnp.bfloat16), wsig1.astype(jnp.bfloat16),
                     ein1, eout1, bmu1, bsig1))
    assert jnp.allclose(out1_bf16, ref1, atol=2e-2, rtol=2e-2)

    # --- Test 3: 128-aligned shapes (no weight pad copy) + forced multi-tile
    #     grid to exercise K accumulation and the multi-Out-tile parallel axis ---
    in2, out2, b2 = 256, 256, 4
    wmu2, wsig2, ein2, eout2, bmu2, bsig2 = init_noisy_linear_params(k_p2, in2, out2)
    x2 = jax.random.normal(k_x2, (b2, in2), dtype=jnp.float32)
    ref2 = _reference(x2, wmu2, wsig2, ein2, eout2, bmu2, bsig2)

    out2_ = jax.block_until_ready(
        noisy_linear(x2, wmu2, wsig2, ein2, eout2, bmu2, bsig2,
                     tn_max=128, tk_max=128))
    assert out2_.shape == (b2, out2)
    assert jnp.allclose(out2_, ref2, atol=1e-4, rtol=1e-4)

    print("KERNEL_OK")
</pallas_src>

<mosaic_0001>
module attributes {stable_mosaic.version = 11 : i64} {
  func.func @noisy_linear_kernel(%arg0: i32, %arg1: i32, %arg2: memref<8x128xf32, #tpu.memory_space<vmem>>, %arg3: memref<128x128xf32, #tpu.memory_space<vmem>>, %arg4: memref<128x128xf32, #tpu.memory_space<vmem>>, %arg5: memref<1x128xf32, #tpu.memory_space<vmem>>, %arg6: memref<1x128xf32, #tpu.memory_space<vmem>>, %arg7: memref<1x128xf32, #tpu.memory_space<vmem>>, %arg8: memref<1x128xf32, #tpu.memory_space<vmem>>, %arg9: memref<8x128xf32, #tpu.memory_space<vmem>>, %arg10: memref<8x128xf32, #tpu.memory_space<vmem>>, %arg11: memref<8x128xf32, #tpu.memory_space<vmem>>) attributes {dimension_semantics = [#tpu.dimension_semantics<parallel>, #tpu.dimension_semantics<arbitrary>], iteration_bounds = array<i64: 1, 1>, scalar_prefetch = 0 : i64, scratch_operands = 2 : i64, tpu.core_type = #tpu.core_type<tc>, window_params = [{transform_indices = @transform_0, window_bounds = array<i64: 8, 128>}, {transform_indices = @transform_1, window_bounds = array<i64: 128, 128>}, {transform_indices = @transform_2, window_bounds = array<i64: 128, 128>}, {transform_indices = @transform_3, window_bounds = array<i64: 1, 128>}, {transform_indices = @transform_4, window_bounds = array<i64: 1, 128>}, {transform_indices = @transform_5, window_bounds = array<i64: 1, 128>}, {transform_indices = @transform_6, window_bounds = array<i64: 1, 128>}, {transform_indices = @transform_7, window_bounds = array<i64: 8, 128>}]} {
    %c0_i32 = arith.constant 0 : i32
    %0 = arith.cmpi eq, %arg1, %c0_i32 : i32
    %1 = arith.extui %0 : i1 to i32
    %c0_i32_0 = arith.constant 0 : i32
    %2 = arith.cmpi ne, %1, %c0_i32_0 : i32
    scf.if %2 {
      %cst_19 = arith.constant 0.000000e+00 : f32
      %20 = vector.broadcast %cst_19 : f32 to vector<8x128xf32>
      %c0_20 = arith.constant 0 : index
      %c0_21 = arith.constant 0 : index
      %21 = vector.load %arg10[%c0_20, %c0_21] : memref<8x128xf32, #tpu.memory_space<vmem>>, vector<8x128xf32>
      tpu.vector_store %arg10[%c0_20, %c0_21], %20 {strides = array<i32>} : memref<8x128xf32, #tpu.memory_space<vmem>>, vector<8x128xf32>,
      %cst_22 = arith.constant 0.000000e+00 : f32
      %22 = vector.broadcast %cst_22 : f32 to vector<8x128xf32>
      %c0_23 = arith.constant 0 : index
      %c0_24 = arith.constant 0 : index
      %23 = vector.load %arg11[%c0_23, %c0_24] : memref<8x128xf32, #tpu.memory_space<vmem>>, vector<8x128xf32>
      tpu.vector_store %arg11[%c0_23, %c0_24], %22 {strides = array<i32>} : memref<8x128xf32, #tpu.memory_space<vmem>>, vector<8x128xf32>,
    } else {
    }
    %c0 = arith.constant 0 : index
    %c0_1 = arith.constant 0 : index
    %3 = vector.load %arg2[%c0, %c0_1] : memref<8x128xf32, #tpu.memory_space<vmem>>, vector<8x128xf32>
    %c0_2 = arith.constant 0 : index
    %c0_3 = arith.constant 0 : index
    %4 = vector.load %arg5[%c0_2, %c0_3] : memref<1x128xf32, #tpu.memory_space<vmem>>, vector<1x128xf32>
    %5 = vector.broadcast %4 : vector<1x128xf32> to vector<8x128xf32>
    %6 = arith.mulf %3, %5 : vector<8x128xf32>
    %c0_4 = arith.constant 0 : index
    %c0_5 = arith.constant 0 : index
    %7 = vector.load %arg3[%c0_4, %c0_5] : memref<128x128xf32, #tpu.memory_space<vmem>>, vector<128x128xf32>
    %c0_6 = arith.constant 0 : index
    %c0_7 = arith.constant 0 : index
    %8 = vector.load %arg4[%c0_6, %c0_7] : memref<128x128xf32, #tpu.memory_space<vmem>>, vector<128x128xf32>
    %c0_8 = arith.constant 0 : index
    %c0_9 = arith.constant 0 : index
    %9 = vector.load %arg10[%c0_8, %c0_9] : memref<8x128xf32, #tpu.memory_space<vmem>>, vector<8x128xf32>
    %cst = arith.constant dense<0.000000e+00> : vector<8x128xf32>
    %10 = tpu.matmul %3, %7, %cst {dimension_numbers = #tpu.dot_dimension_numbers<[1], [1], [0], [0], [0, 0, 1, 0], [], []>} : vector<8x128xf32>, vector<128x128xf32>, vector<8x128xf32> -> vector<8x128xf32>
    %11 = arith.addf %9, %10 : vector<8x128xf32>
    %c0_10 = arith.constant 0 : index
    %c0_11 = arith.constant 0 : index
    %12 = vector.load %arg10[%c0_10, %c0_11] : memref<8x128xf32, #tpu.memory_space<vmem>>, vector<8x128xf32>
    tpu.vector_store %arg10[%c0_10, %c0_11], %11 {strides = array<i32>} : memref<8x128xf32, #tpu.memory_space<vmem>>, vector<8x128xf32>,
    %c0_12 = arith.constant 0 : index
    %c0_13 = arith.constant 0 : index
    %13 = vector.load %arg11[%c0_12, %c0_13] : memref<8x128xf32, #tpu.memory_space<vmem>>, vector<8x128xf32>
    %cst_14 = arith.constant dense<0.000000e+00> : vector<8x128xf32>
    %14 = tpu.matmul %6, %8, %cst_14 {dimension_numbers = #tpu.dot_dimension_numbers<[1], [1], [0], [0], [0, 0, 1, 0], [], []>} : vector<8x128xf32>, vector<128x128xf32>, vector<8x128xf32> -> vector<8x128xf32>
    %15 = arith.addf %13, %14 : vector<8x128xf32>
    %c0_15 = arith.constant 0 : index
    %c0_16 = arith.constant 0 : index
    %16 = vector.load %arg11[%c0_15, %c0_16] : memref<8x128xf32, #tpu.memory_space<vmem>>, vector<8x128xf32>
    tpu.vector_store %arg11[%c0_15, %c0_16], %15 {strides = array<i32>} : memref<8x128xf32, #tpu.memory_space<vmem>>, vector<8x128xf32>,
    %c0_i32_17 = arith.constant 0 : i32
    %17 = arith.cmpi eq, %arg1, %c0_i32_17 : i32
    %18 = arith.extui %17 : i1 to i32
    %c0_i32_18 = arith.constant 0 : i32
    %19 = arith.cmpi ne, %18, %c0_i32_18 : i32
    scf.if %19 {
      %c0_19 = arith.constant 0 : index
      %c0_20 = arith.constant 0 : index
      %20 = vector.load %arg6[%c0_19, %c0_20] : memref<1x128xf32, #tpu.memory_space<vmem>>, vector<1x128xf32>
      %c0_21 = arith.constant 0 : index
      %c0_22 = arith.constant 0 : index
      %21 = vector.load %arg7[%c0_21, %c0_22] : memref<1x128xf32, #tpu.memory_space<vmem>>, vector<1x128xf32>
      %c0_23 = arith.constant 0 : index
      %c0_24 = arith.constant 0 : index
      %22 = vector.load %arg8[%c0_23, %c0_24] : memref<1x128xf32, #tpu.memory_space<vmem>>, vector<1x128xf32>
      %23 = arith.mulf %22, %20 : vector<1x128xf32>
      %24 = arith.addf %21, %23 : vector<1x128xf32>
      %c0_25 = arith.constant 0 : index
      %c0_26 = arith.constant 0 : index
      %25 = vector.load %arg10[%c0_25, %c0_26] : memref<8x128xf32, #tpu.memory_space<vmem>>, vector<8x128xf32>
      %c0_27 = arith.constant 0 : index
      %c0_28 = arith.constant 0 : index
      %26 = vector.load %arg11[%c0_27, %c0_28] : memref<8x128xf32, #tpu.memory_space<vmem>>, vector<8x128xf32>
      %27 = vector.broadcast %20 : vector<1x128xf32> to vector<8x128xf32>
      %28 = arith.mulf %27, %26 : vector<8x128xf32>
      %29 = arith.addf %25, %28 : vector<8x128xf32>
      %30 = vector.broadcast %24 : vector<1x128xf32> to vector<8x128xf32>
      %31 = arith.addf %29, %30 : vector<8x128xf32>
      %c0_29 = arith.constant 0 : index
      %c0_30 = arith.constant 0 : index
      %32 = vector.load %arg9[%c0_29, %c0_30] : memref<8x128xf32, #tpu.memory_space<vmem>>, vector<8x128xf32>
      tpu.vector_store %arg9[%c0_29, %c0_30], %31 {strides = array<i32>} : memref<8x128xf32, #tpu.memory_space<vmem>>, vector<8x128xf32>,
    } else {
    }
    return
  }
  func.func @transform_0(%arg0: i32, %arg1: i32) -> (i32, i32) {
    %c0_i32 = arith.constant 0 : i32
    %c0_i32_0 = arith.constant 0 : i32
    return %c0_i32, %arg1 : i32, i32
  }
  func.func @transform_1(%arg0: i32, %arg1: i32) -> (i32, i32) {
    %c0_i32 = arith.constant 0 : i32
    return %arg0, %arg1 : i32, i32
  }
  func.func @transform_2(%arg0: i32, %arg1: i32) -> (i32, i32) {
    %c0_i32 = arith.constant 0 : i32
    return %arg0, %arg1 : i32, i32
  }
  func.func @transform_3(%arg0: i32, %arg1: i32) -> (i32, i32) {
    %c0_i32 = arith.constant 0 : i32
    %c0_i32_0 = arith.constant 0 : i32
    return %c0_i32, %arg1 : i32, i32
  }
  func.func @transform_4(%arg0: i32, %arg1: i32) -> (i32, i32) {
    %c0_i32 = arith.constant 0 : i32
    %c0_i32_0 = arith.constant 0 : i32
    return %c0_i32, %arg0 : i32, i32
  }
  func.func @transform_5(%arg0: i32, %arg1: i32) -> (i32, i32) {
    %c0_i32 = arith.constant 0 : i32
    %c0_i32_0 = arith.constant 0 : i32
    return %c0_i32, %arg0 : i32, i32
  }
  func.func @transform_6(%arg0: i32, %arg1: i32) -> (i32, i32) {
    %c0_i32 = arith.constant 0 : i32
    %c0_i32_0 = arith.constant 0 : i32
    return %c0_i32, %arg0 : i32, i32
  }
  func.func @transform_7(%arg0: i32, %arg1: i32) -> (i32, i32) {
    %c0_i32 = arith.constant 0 : i32
    %c0_i32_0 = arith.constant 0 : i32
    return %c0_i32, %arg0 : i32, i32
  }
}

</mosaic_0001>

<bundles_post_ra>
// kernel: tpu_custom_call.1
= control target key start
LH: loop header
LB: loop body
LE: loop exit
PB: predicated region body
PF: predicated region fallthrough
CT: control target
= control target key end

     0   :  { %12 = vsyncpa [#allocation5], 0  ;;  %s688_s0 = inlined_call_operand.hbm [shape: f32[8,128], index: 0, kind: input, shape index: {}]   ;;  %s689_s1 = inlined_call_operand.hbm [shape: f32[128,128], index: 1, kind: input, shape index: {}]   ;;  %s690_s2 = inlined_call_operand.hbm [shape: f32[128,128], index: 2, kind: input, shape index: {}]   ;;  %s691_s3 = inlined_call_operand.vmem [shape: f32[1,128], index: 3, kind: input, shape index: {}]   ;;  %s692_s4 = inlined_call_operand.vmem [shape: f32[1,128], index: 4, kind: input, shape index: {}]   ;;  %s693_s5 = inlined_call_operand.vmem [shape: f32[1,128], index: 5, kind: input, shape index: {}]   ;;  %s694_s6 = inlined_call_operand.vmem [shape: f32[1,128], index: 6, kind: input, shape index: {}]   ;;  %s695_s7 = inlined_call_operand.hbm [shape: f32[8,128], index: 7, kind: output, shape index: {}]  }
   0x1   :  { %13 = vsyncpa [#allocation8], 0 }
   0x2   :  { %14 = vsyncpa [#allocation6], 0  ;;  %s557_s24 = smov [#allocation7]   ;;  %s463_s28 = scalar_lea.hbm %s689_s1, 2048 }
   0x3   :  { %s30_s25 = sshll.u32 %s557_s24, 4  ;;  %p464_p0 = scmp.ne.s32.totalorder %s689_s1, %s463_s28  ;;  %s31_s25 = int_to_ptr.vmem [resolvable:$true] %s30_s25 }
   0x4   :  { %p467_p1 = scmp.lt.u32.totalorder %s463_s28, %s689_s1 }
   0x6   :  { %p469_p2 = pnand %p467_p1, %p464_p0 }
   0x8   :  { %472 = shalt.err (!%p469_p2)
}
   0x9   :  { %s473_s10 = scalar_lea.vmem %s31_s25, 2048  ;;  %p478_p4 = scmp.lt.s32.totalorder %s31_s25, %s31_s25 }
   0xa   :  { %p474_p3 = scmp.ne.s32.totalorder %s31_s25, %s473_s10  ;;  %p479_p5 = scmp.lt.s32.totalorder %s473_s10, %s473_s10 }
   0xc   :  { %p480_p6 = por %p479_p5, %p478_p4 }
   0xe   :  { %p481_p7 = pnand %p480_p6, %p474_p3 }
  0x10   :  { %484 = shalt.err (!%p481_p7)
}
  0x11   :  { %s558_s11 = smov 128   ;;  %s559_s12 = smov 8  }
  0x12   :  { %36 = dma.hbm_to_vmem [thread:$0]  %s689_s1, 2048, %s31_s25, [#allocation8], %s558_s11, %s558_s11, %s559_s12  }
  0x13   :  { %s560_s15 = smov [#allocation4]   ;;  %s561_s17 = smov [#allocation9]  }
  0x14   :  { %s21_s16 = sshll.u32 %s560_s15, 4  ;;  %s42_s18 = sshll.u32 %s561_s17, 4  ;;  %s22_s16 = int_to_ptr.vmem [resolvable:$true] %s21_s16  ;;  %s43_s18 = int_to_ptr.vmem [resolvable:$true] %s42_s18 }
  0x15   :  { %s485_s21 = scalar_lea.hbm %s688_s0, 128 }
  0x16   :  { %p486_p8 = scmp.ne.s32.totalorder %s688_s0, %s485_s21  ;;  %p489_p9 = scmp.lt.u32.totalorder %s485_s21, %s688_s0 }
  0x18   :  { %p491_p10 = pnand %p489_p9, %p486_p8 }
  0x1a   :  { %494 = shalt.err (!%p491_p10)
}
  0x1b   :  { %s495_s1 = scalar_lea.vmem %s22_s16, 128  ;;  %p500_p12 = scmp.lt.s32.totalorder %s22_s16, %s22_s16 }
  0x1c   :  { %p496_p11 = scmp.ne.s32.totalorder %s22_s16, %s495_s1  ;;  %p501_p13 = scmp.lt.s32.totalorder %s495_s1, %s495_s1 }
  0x1e   :  { %p502_p0 = por %p501_p13, %p500_p12 }
  0x20   :  { %p503_p1 = pnand %p502_p0, %p496_p11 }
  0x22   :  { %506 = shalt.err (!%p503_p1)
}
  0x23   :  { %24 = dma.hbm_to_vmem [thread:$0]  %s688_s0, 128, %s22_s16, [#allocation5]  }
  0x24   :  { %s507_s30 = scalar_lea.hbm %s690_s2, 2048 }
  0x25   :  { %p508_p2 = scmp.ne.s32.totalorder %s690_s2, %s507_s30  ;;  %p511_p3 = scmp.lt.u32.totalorder %s507_s30, %s690_s2 }
  0x27   :  { %p513_p4 = pnand %p511_p3, %p508_p2 }
  0x29   :  { %516 = shalt.err (!%p513_p4)
}
  0x2a   :  { %s517_s14 = scalar_lea.vmem %s43_s18, 2048  ;;  %p522_p6 = scmp.lt.s32.totalorder %s43_s18, %s43_s18 }
  0x2b   :  { %p518_p5 = scmp.ne.s32.totalorder %s43_s18, %s517_s14  ;;  %p523_p7 = scmp.lt.s32.totalorder %s517_s14, %s517_s14 }
  0x2d   :  { %p524_p8 = por %p523_p7, %p522_p6 }
  0x2f   :  { %p525_p9 = pnand %p524_p8, %p518_p5 }
  0x31   :  { %528 = shalt.err (!%p525_p9)
}
  0x32   :  { %48 = dma.hbm_to_vmem [thread:$0]  %s690_s2, 2048, %s43_s18, [#allocation8], %s558_s11, %s558_s11, %s559_s12  }
  0x33   :  { %551 = dma.done.wait [#allocation5], 128  }
  0x34   :  { %552 = vsyncadd [#allocation5], 4294967168 }
  0x35   :  { %553 = dma.done.wait [#allocation8], 4096  }
  0x36   :  { %554 = vsyncadd [#allocation8], 4294963200  ;;  %v562_v0 = vmov 0.0|0.0   ;;  %vm563_vm0 = vmmov 0   ;;  %v564_v1 = vmov 0.0   ;;  %v97_v2 = vld [vmem:[#allocation9] sm:$0xff]  ;;  %v270_v53 = vlaneseq }
  0x37   :  { %430 = vmatprep.subr.bf16.mxu1 %v562_v0  ;;  %406 = vmatprep.subr.bf16.mxu0 %v562_v0  ;;  %v98_v3 = vld [vmem:[#allocation9 + $0x8] sm:$0xff]  ;;  %v81_v4 = vld [vmem:[#allocation7] sm:$0xff]  ;;  %v99_v8 = vld [vmem:[#allocation9 + $0x10] sm:$0xff] }
  0x38   :  { %403 = vmatprep.mubr.msk.f32.mxu1 %vm563_vm0, %v564_v1  ;;  %368 = vmatprep.mubr.msk.f32.mxu0 %vm563_vm0, %v564_v1  ;;  %v431_v5 = vpack.c.bf16 %v98_v3, %v97_v2  ;;  %v82_v6 = vld [vmem:[#allocation7 + $0x8] sm:$0xff]  ;;  %v100_v9 = vld [vmem:[#allocation9 + $0x18] sm:$0xff]  ;;  %v83_v10 = vld [vmem:[#allocation7 + $0x10] sm:$0xff]  ;;  %v271_v54 = vshrl.u32 %v270_v53, 7 }
  0x39   :  { %v407_v7 = vpack.c.bf16 %v82_v6, %v81_v4  ;;  %v84_v11 = vld [vmem:[#allocation7 + $0x18] sm:$0xff]  ;;  %v434_v12 = vpack.c.bf16 %v100_v9, %v99_v8  ;;  %v101_v14 = vld [vmem:[#allocation9 + $0x20] sm:$0xff]  ;;  %v102_v15 = vld [vmem:[#allocation9 + $0x28] sm:$0xff] }
  0x3a   :  { %432 = vmatpush3.bf16.xpose.msra.mxu1 %v431_v5  ;;  %v410_v13 = vpack.c.bf16 %v84_v11, %v83_v10  ;;  %v85_v16 = vld [vmem:[#allocation7 + $0x20] sm:$0xff]  ;;  %v86_v17 = vld [vmem:[#allocation7 + $0x28] sm:$0xff]  ;;  %v437_v18 = vpack.c.bf16 %v102_v15, %v101_v14  ;;  %v103_v20 = vld [vmem:[#allocation9 + $0x30] sm:$0xff]  ;;  %v272_v58 = vsub.s32 0, %v271_v54 }
  0x3b   :  { %408 = vmatpush3.bf16.xpose.msra.mxu0 %v407_v7  ;;  %433 = vmatprep.subr.bf16.mxu1 %v562_v0  ;;  %v413_v19 = vpack.c.bf16 %v86_v17, %v85_v16  ;;  %v104_v21 = vld [vmem:[#allocation9 + $0x38] sm:$0xff]  ;;  %v87_v22 = vld [vmem:[#allocation7 + $0x30] sm:$0xff]  ;;  %v105_v26 = vld [vmem:[#allocation9 + $0x40] sm:$0xff] }
  0x3c   :  { %409 = vmatprep.subr.bf16.mxu0 %v562_v0  ;;  %v88_v23 = vld [vmem:[#allocation7 + $0x38] sm:$0xff]  ;;  %v440_v24 = vpack.c.bf16 %v104_v21, %v103_v20  ;;  %v106_v27 = vld [vmem:[#allocation9 + $0x48] sm:$0xff]  ;;  %v89_v28 = vld [vmem:[#allocation7 + $0x40] sm:$0xff] }
  0x3d   :  { %v416_v25 = vpack.c.bf16 %v88_v23, %v87_v22  ;;  %v90_v29 = vld [vmem:[#allocation7 + $0x48] sm:$0xff]  ;;  %v443_v30 = vpack.c.bf16 %v106_v27, %v105_v26  ;;  %v107_v32 = vld [vmem:[#allocation9 + $0x50] sm:$0xff]  ;;  %v108_v33 = vld [vmem:[#allocation9 + $0x58] sm:$0xff] }
  0x3e   :  { %v419_v31 = vpack.c.bf16 %v90_v29, %v89_v28  ;;  %v91_v34 = vld [vmem:[#allocation7 + $0x50] sm:$0xff]  ;;  %v92_v35 = vld [vmem:[#allocation7 + $0x58] sm:$0xff]  ;;  %v446_v36 = vpack.c.bf16 %v108_v33, %v107_v32  ;;  %v109_v38 = vld [vmem:[#allocation9 + $0x60] sm:$0xff] }
  0x3f   :  { %v422_v37 = vpack.c.bf16 %v92_v35, %v91_v34  ;;  %v110_v39 = vld [vmem:[#allocation9 + $0x68] sm:$0xff]  ;;  %v93_v40 = vld [vmem:[#allocation7 + $0x60] sm:$0xff]  ;;  %v111_v44 = vld [vmem:[#allocation9 + $0x70] sm:$0xff] }
  0x40   :  { %v94_v41 = vld [vmem:[#allocation7 + $0x68] sm:$0xff]  ;;  %v449_v42 = vpack.c.bf16 %v110_v39, %v109_v38  ;;  %v112_v45 = vld [vmem:[#allocation9 + $0x78] sm:$0xff]  ;;  %v95_v46 = vld [vmem:[#allocation7 + $0x70] sm:$0xff] }
  0x41   :  { %v425_v43 = vpack.c.bf16 %v94_v41, %v93_v40  ;;  %v96_v47 = vld [vmem:[#allocation7 + $0x78] sm:$0xff]  ;;  %v452_v48 = vpack.c.bf16 %v112_v45, %v111_v44 }
  0x42   :  { %435 = vmatpush3.bf16.xpose.msra.mxu1 %v434_v12  ;;  %v428_v49 = vpack.c.bf16 %v96_v47, %v95_v46  ;;  %v72_v50 = vld [vmem:[#allocation4] sm:$0xff] }
  0x43   :  { %411 = vmatpush3.bf16.xpose.msra.mxu0 %v410_v13  ;;  %436 = vmatprep.subr.bf16.mxu1 %v562_v0  ;;  %v301_v51 = vld [vmem:[%s691_s3] ss:$0 sm:$0xff]  ;;  %s565_s3 = smov [#allocation10]  }
  0x44   :  { %412 = vmatprep.subr.bf16.mxu0 %v562_v0  ;;  %v80_v52 = vmul.f32 %v301_v51, %v72_v50  ;;  %v262_v55 = vld [vmem:[%s692_s4] sm:$0x1]  ;;  %s291_s4 = sshll.u32 %s565_s3, 4  ;;  %s292_s4 = int_to_ptr.vmem [resolvable:$true] %s291_s4 }
  0x45   :  { %v264_v56 = vld [vmem:[%s694_s6] sm:$0x1]  ;;  %v273_v60 = vrot.slane %v262_v55, %v272_v58  ;;  %s529_s6 = scalar_lea.vmem %s292_s4, 128  ;;  %p534_p11 = scmp.lt.s32.totalorder %s292_s4, %s292_s4 }
  0x46   :  { %v265_v57 = vmul.f32 %v264_v56, %v262_v55  ;;  %v263_v59 = vld [vmem:[%s693_s5] sm:$0x1]  ;;  %p530_p10 = scmp.ne.s32.totalorder %s292_s4, %s529_s6  ;;  %p535_p12 = scmp.lt.s32.totalorder %s529_s6, %s529_s6 }
  0x48   :  { %v266_v61 = vadd.f32 %v265_v57, %v263_v59  ;;  %p536_p13 = por %p535_p12, %p534_p11 }
  0x4a   :  { %438 = vmatpush3.bf16.xpose.msra.mxu1 %v437_v18  ;;  %v281_v1 = vrot.slane %v266_v61, %v272_v58  ;;  %p537_p0 = pnand %p536_p13, %p530_p10 }
  0x4b   :  { %414 = vmatpush3.bf16.xpose.msra.mxu0 %v413_v19  ;;  %439 = vmatprep.subr.bf16.mxu1 %v562_v0 }
  0x4c   :  { %415 = vmatprep.subr.bf16.mxu0 %v562_v0 }
  0x52   :  { %441 = vmatpush3.bf16.xpose.msra.mxu1 %v440_v24 }
  0x53   :  { %417 = vmatpush3.bf16.xpose.msra.mxu0 %v416_v25  ;;  %442 = vmatprep.subr.bf16.mxu1 %v562_v0 }
  0x54   :  { %418 = vmatprep.subr.bf16.mxu0 %v562_v0 }
  0x5a   :  { %444 = vmatpush3.bf16.xpose.msra.mxu1 %v443_v30 }
  0x5b   :  { %420 = vmatpush3.bf16.xpose.msra.mxu0 %v419_v31  ;;  %445 = vmatprep.subr.bf16.mxu1 %v562_v0 }
  0x5c   :  { %421 = vmatprep.subr.bf16.mxu0 %v562_v0 }
  0x62   :  { %447 = vmatpush3.bf16.xpose.msra.mxu1 %v446_v36 }
  0x63   :  { %423 = vmatpush3.bf16.xpose.msra.mxu0 %v422_v37  ;;  %448 = vmatprep.subr.bf16.mxu1 %v562_v0 }
  0x64   :  { %424 = vmatprep.subr.bf16.mxu0 %v562_v0 }
  0x6a   :  { %450 = vmatpush3.bf16.xpose.msra.mxu1 %v449_v42 }
  0x6b   :  { %426 = vmatpush3.bf16.xpose.msra.mxu0 %v425_v43  ;;  %451 = vmatprep.subr.bf16.mxu1 %v562_v0 }
  0x6c   :  { %427 = vmatprep.subr.bf16.mxu0 %v562_v0 }
  0x72   :  { %453 = vmatpush3.bf16.xpose.msra.mxu1 %v452_v48 }
  0x73   :  { %429 = vmatpush3.bf16.xpose.msra.mxu0 %v428_v49 }
  0x79   :  { %404 = vmatmul.mubr.f32.vlgmr.msra.gmra.mrb[0].mxu1 %v80_v52 }
  0x7a   :  { %369 = vmatmul.mubr.f32.vlgmr.msra.gmra.mrb[0].mxu0 %v72_v50 }
 0x14c   :  { %v253_v62 = vpop.f32.mrb[0].mxu1 }
 0x14d   :  { %v275_v63 = vmul.f32 %v273_v60, %v253_v62  ;;  %v180_v0 = vpop.f32.mrb[0].mxu0  ;;  %v405_v2 = vpop.f32.mrb[1].mxu1 }
 0x14e   :  { %v370_v3 = vpop.f32.mrb[1].mxu0 }
 0x14f   :  { %v276_v4 = vadd.f32 %v275_v63, %v180_v0 }
 0x151   :  { %v283_v5 = vadd.f32 %v281_v1, %v276_v4 }
 0x153   :  { %284 = vst [vmem:[#allocation10] sm:$0xff] %v283_v5 }
 0x154   :  { %540 = shalt.err (!%p537_p0)
}
 0x155   :  { %s541_s22 = scalar_lea.hbm %s695_s7, 128 }
 0x156   :  { %p542_p1 = scmp.ne.s32.totalorder %s695_s7, %s541_s22  ;;  %p545_p2 = scmp.lt.u32.totalorder %s541_s22, %s695_s7 }
 0x158   :  { %p547_p3 = pnand %p545_p2, %p542_p1 }
 0x15a   :  { %550 = shalt.err (!%p547_p3)
}
 0x15b   :  { %294 = dma.vmem_to_hbm [thread:$0]  %s292_s4, 128, %s695_s7, [#allocation6]  }
 0x15c   :  { %555 = dma.done.wait [#allocation6], 128  }
 0x15d   :  { %556 = vsyncadd [#allocation6], 4294967168 }
 0x15e   :  { %298 = vsyncpa [#allocation5], 1 }
 0x15f   :  { %299 = vsyncpa [#allocation8], 1 }
 0x160   :  { %300 = vsyncpa [#allocation6], 1 }

</bundles_post_ra>
